<compile_context>
chip_gen: v5e
topology: v5e:2x2
jax: 0.10.0
libtpu: 0.0.40
codegen_flags: <defaults>
</compile_context>

<pallas_src>
import jax
import jax.numpy as jnp
from jax.experimental import pallas as pl
from jax.experimental.pallas import tpu as pltpu

LANE = 128
SUBLANE = 8


def _cls_head_kernel(x_ref, w1_ref, b1_ref, w2_ref, b2_ref, o_ref, acc_ref):
    """Grid = (row_tiles [parallel], intermediate-hidden slabs [arbitrary])."""
    k = pl.program_id(1)

    @pl.when(k == 0)
    def _init():
        acc_ref[...] = jnp.zeros_like(acc_ref)

    # dense slab -> tanh (f32 epilogue regardless of weight dtype)
    h = jnp.dot(x_ref[...], w1_ref[...], preferred_element_type=jnp.float32)
    h = jnp.tanh(h + b1_ref[...])
    # out_proj contribution of this slab (f32 accumulation)
    acc_ref[...] += jnp.dot(h.astype(w2_ref.dtype), w2_ref[...],
                            preferred_element_type=jnp.float32)

    @pl.when(k == pl.num_programs(1) - 1)
    def _store():
        o_ref[...] = (acc_ref[...] + b2_ref[...]).astype(o_ref.dtype)


def prepare_classification_head_params(w_dense, b_dense, w_out, b_out,
                                        weight_dtype=jnp.float32):
    """One-time parameter prep (hoisted out of the per-call hot path)."""
    H = w_dense.shape[0]
    N = w_out.shape[1]
    n_pad = ((N + LANE - 1) // LANE) * LANE  # lane-dense (unmasked vst) output width
    w_out_p = jnp.zeros((H, n_pad), weight_dtype).at[:, :N].set(
        w_out.astype(weight_dtype))
    b_out_p = jnp.zeros((1, n_pad), jnp.float32).at[0, :N].set(
        b_out.astype(jnp.float32))
    return {
        "w_dense": w_dense.astype(weight_dtype),
        "b_dense": b_dense.reshape(1, H).astype(jnp.float32),  # (1, H): single sublane row
        "w_out": w_out_p,
        "b_out": b_out_p,
        "num_labels": N,
    }


def _spec(shape, index_map, single_buffer=False):
    if single_buffer:
        try:
            return pl.BlockSpec(shape, index_map, pipeline_mode=pl.Buffered(1))
        except (TypeError, AttributeError):  # older jax: fall back to default buffering
            pass
    return pl.BlockSpec(shape, index_map)


def classification_head_forward(hidden_states, params):
    """y = tanh(x @ W_dense + b_dense) @ W_out + b_out.

    TODO(synk): nn.Dropout is identity at inference (model.eval()); no RNG mask applied.
    """
    w1, b1, w2, b2 = params["w_dense"], params["b_dense"], params["w_out"], params["b_out"]
    N = params["num_labels"]
    M, H = hidden_states.shape
    n_pad = w2.shape[1]
    out_dtype = hidden_states.dtype

    # Ragged batches: pad rows to a sublane multiple instead of one giant block.
    m_pad = ((M + SUBLANE - 1) // SUBLANE) * SUBLANE
    x = hidden_states
    if m_pad != M:
        x = jnp.zeros((m_pad, H), hidden_states.dtype).at[:M].set(hidden_states)

    # Row tile: bounded, divides m_pad, >=2 grid steps for M>=16 (v7x second TensorCore).
    if m_pad <= SUBLANE:
        tm = m_pad
    else:
        tm = min(256, max(SUBLANE, (m_pad // 2) // SUBLANE * SUBLANE))
        while m_pad % tm != 0:
            tm -= SUBLANE

    # Intermediate-hidden slab size: stream the dense weight for large H.
    if H > 1024 and H % 512 == 0:
        tk = 512
    elif H > 1024 and H % 256 == 0:
        tk = 256
    else:
        tk = H
    nk = H // tk
    weights_resident = nk == 1  # constant index_map -> single buffer
    grid = (m_pad // tm, nk)

    # Scoped-VMEM limit from actual tile footprint, with headroom below v7x physical.
    x_b = jnp.dtype(hidden_states.dtype).itemsize
    w_b = jnp.dtype(w1.dtype).itemsize
    o_b = jnp.dtype(out_dtype).itemsize
    w_buf = 1 if weights_resident else 2
    vmem_need = (2 * tm * H * x_b
                 + w_buf * H * tk * w_b
                 + w_buf * tk * n_pad * w_b
                 + 2 * tm * n_pad * o_b
                 + tm * n_pad * 4
                 + 4 * n_pad * 4)
    vmem_limit = int(min(max(2 * vmem_need, 32 * 1024 * 1024), 56 * 1024 * 1024))

    out = pl.pallas_call(
        _cls_head_kernel,
        out_shape=jax.ShapeDtypeStruct((m_pad, n_pad), out_dtype),
        grid=grid,
        in_specs=[
            pl.BlockSpec((tm, H), lambda i, k: (i, 0)),                     # activations
            _spec((H, tk), lambda i, k: (0, k), weights_resident),          # dense weight slab
            _spec((1, tk), lambda i, k: (0, k), weights_resident),          # dense bias slab
            _spec((tk, n_pad), lambda i, k: (k, 0), weights_resident),      # out_proj slab
            _spec((1, n_pad), lambda i, k: (0, 0), True),                   # out_proj bias
        ],
        out_specs=pl.BlockSpec((tm, n_pad), lambda i, k: (i, 0)),
        scratch_shapes=[pltpu.VMEM((tm, n_pad), jnp.float32)],
        compiler_params=pltpu.CompilerParams(
            dimension_semantics=("parallel", "arbitrary"),
            vmem_limit_bytes=vmem_limit,
        ),
    )(x, w1, b1, w2, b2)
    return out[:M, :N]


if __name__ == "__main__":
    BATCH = 8
    HIDDEN = 32
    NUM_LABELS = 1

    key = jax.random.PRNGKey(0)
    kx, kw1, kb1, kw2, kb2 = jax.random.split(key, 5)
    hidden_states = jax.random.normal(kx, (BATCH, HIDDEN), jnp.float32)
    w_dense = jax.random.normal(kw1, (HIDDEN, HIDDEN), jnp.float32) * 0.02
    b_dense = jax.random.normal(kb1, (HIDDEN,), jnp.float32) * 0.02
    w_out = jax.random.normal(kw2, (HIDDEN, NUM_LABELS), jnp.float32) * 0.02
    b_out = jax.random.normal(kb2, (NUM_LABELS,), jnp.float32) * 0.02

    # Exact f32 path.
    params = prepare_classification_head_params(w_dense, b_dense, w_out, b_out)
    y = classification_head_forward(hidden_states, params)
    jax.block_until_ready(y)

    ref = jnp.tanh(hidden_states @ w_dense + b_dense[None, :]) @ w_out + b_out[None, :]
    assert y.shape == (BATCH, NUM_LABELS)
    assert jnp.allclose(y, ref, rtol=1e-5, atol=1e-5), float(jnp.max(jnp.abs(y - ref)))

    # bf16 weight-streaming path (v6e/v7x bandwidth lever); compare against a reference
    # built from the same bf16-rounded weights.
    params_bf16 = prepare_classification_head_params(
        w_dense, b_dense, w_out, b_out, weight_dtype=jnp.bfloat16)
    y_bf16 = classification_head_forward(hidden_states, params_bf16)
    jax.block_until_ready(y_bf16)
    w1r = w_dense.astype(jnp.bfloat16).astype(jnp.float32)
    w2r = w_out.astype(jnp.bfloat16).astype(jnp.float32)
    h_r = jnp.tanh(hidden_states @ w1r + b_dense[None, :]).astype(jnp.bfloat16).astype(jnp.float32)
    ref_bf16 = h_r @ w2r + b_out[None, :]
    assert jnp.allclose(y_bf16, ref_bf16, rtol=1e-2, atol=1e-2), float(
        jnp.max(jnp.abs(y_bf16 - ref_bf16)))

    # Ragged-batch path (row padding instead of one giant block).
    y_rag = classification_head_forward(hidden_states[:5], params)
    jax.block_until_ready(y_rag)
    assert jnp.allclose(y_rag, ref[:5], rtol=1e-5, atol=1e-5)

    print("KERNEL_OK")
</pallas_src>

<mosaic_0001>
module attributes {stable_mosaic.version = 11 : i64} {
  func.func @_cls_head_kernel(%arg0: i32, %arg1: i32, %arg2: memref<8x32xf32, #tpu.memory_space<vmem>>, %arg3: memref<32x32xf32, #tpu.memory_space<vmem>>, %arg4: memref<1x32xf32, #tpu.memory_space<vmem>>, %arg5: memref<32x128xf32, #tpu.memory_space<vmem>>, %arg6: memref<1x128xf32, #tpu.memory_space<vmem>>, %arg7: memref<8x128xf32, #tpu.memory_space<vmem>>, %arg8: memref<8x128xf32, #tpu.memory_space<vmem>>) attributes {dimension_semantics = [#tpu.dimension_semantics<parallel>, #tpu.dimension_semantics<arbitrary>], iteration_bounds = array<i64: 1, 1>, scalar_prefetch = 0 : i64, scratch_operands = 1 : i64, tpu.core_type = #tpu.core_type<tc>, window_params = [{transform_indices = @transform_0, window_bounds = array<i64: 8, 32>}, {pipeline_mode = #tpu.pipeline_mode<synchronous>, transform_indices = @transform_1, window_bounds = array<i64: 32, 32>}, {pipeline_mode = #tpu.pipeline_mode<synchronous>, transform_indices = @transform_2, window_bounds = array<i64: 1, 32>}, {pipeline_mode = #tpu.pipeline_mode<synchronous>, transform_indices = @transform_3, window_bounds = array<i64: 32, 128>}, {pipeline_mode = #tpu.pipeline_mode<synchronous>, transform_indices = @transform_4, window_bounds = array<i64: 1, 128>}, {transform_indices = @transform_5, window_bounds = array<i64: 8, 128>}]} {
    %c0_i32 = arith.constant 0 : i32
    %0 = arith.cmpi eq, %arg1, %c0_i32 : i32
    %1 = arith.extui %0 : i1 to i32
    %c0_i32_0 = arith.constant 0 : i32
    %2 = arith.cmpi ne, %1, %c0_i32_0 : i32
    scf.if %2 {
      %cst_15 = arith.constant 0.000000e+00 : f32
      %18 = vector.broadcast %cst_15 : f32 to vector<8x128xf32>
      %c0_16 = arith.constant 0 : index
      %c0_17 = arith.constant 0 : index
      %19 = vector.load %arg8[%c0_16, %c0_17] : memref<8x128xf32, #tpu.memory_space<vmem>>, vector<8x128xf32>
      tpu.vector_store %arg8[%c0_16, %c0_17], %18 {strides = array<i32>} : memref<8x128xf32, #tpu.memory_space<vmem>>, vector<8x128xf32>,
    } else {
    }
    %c0 = arith.constant 0 : index
    %c0_1 = arith.constant 0 : index
    %3 = vector.load %arg2[%c0, %c0_1] : memref<8x32xf32, #tpu.memory_space<vmem>>, vector<8x32xf32>
    %c0_2 = arith.constant 0 : index
    %c0_3 = arith.constant 0 : index
    %4 = vector.load %arg3[%c0_2, %c0_3] : memref<32x32xf32, #tpu.memory_space<vmem>>, vector<32x32xf32>
    %cst = arith.constant dense<0.000000e+00> : vector<8x32xf32>
    %5 = tpu.matmul %3, %4, %cst {dimension_numbers = #tpu.dot_dimension_numbers<[1], [0], [0], [1], [0, 0, 1, 1], [], []>} : vector<8x32xf32>, vector<32x32xf32>, vector<8x32xf32> -> vector<8x32xf32>
    %c0_4 = arith.constant 0 : index
    %c0_5 = arith.constant 0 : index
    %6 = vector.load %arg4[%c0_4, %c0_5] : memref<1x32xf32, #tpu.memory_space<vmem>>, vector<1x32xf32>
    %7 = vector.broadcast %6 : vector<1x32xf32> to vector<8x32xf32>
    %8 = arith.addf %5, %7 : vector<8x32xf32>
    %9 = math.tanh %8 : vector<8x32xf32>
    %c0_6 = arith.constant 0 : index
    %c0_7 = arith.constant 0 : index
    %10 = vector.load %arg8[%c0_6, %c0_7] : memref<8x128xf32, #tpu.memory_space<vmem>>, vector<8x128xf32>
    %c0_8 = arith.constant 0 : index
    %c0_9 = arith.constant 0 : index
    %11 = vector.load %arg5[%c0_8, %c0_9] : memref<32x128xf32, #tpu.memory_space<vmem>>, vector<32x128xf32>
    %cst_10 = arith.constant dense<0.000000e+00> : vector<8x128xf32>
    %12 = tpu.matmul %9, %11, %cst_10 {dimension_numbers = #tpu.dot_dimension_numbers<[1], [0], [0], [1], [0, 0, 1, 1], [], []>} : vector<8x32xf32>, vector<32x128xf32>, vector<8x128xf32> -> vector<8x128xf32>
    %13 = arith.addf %10, %12 : vector<8x128xf32>
    %c0_11 = arith.constant 0 : index
    %c0_12 = arith.constant 0 : index
    %14 = vector.load %arg8[%c0_11, %c0_12] : memref<8x128xf32, #tpu.memory_space<vmem>>, vector<8x128xf32>
    tpu.vector_store %arg8[%c0_11, %c0_12], %13 {strides = array<i32>} : memref<8x128xf32, #tpu.memory_space<vmem>>, vector<8x128xf32>,
    %c0_i32_13 = arith.constant 0 : i32
    %15 = arith.cmpi eq, %arg1, %c0_i32_13 : i32
    %16 = arith.extui %15 : i1 to i32
    %c0_i32_14 = arith.constant 0 : i32
    %17 = arith.cmpi ne, %16, %c0_i32_14 : i32
    scf.if %17 {
      %c0_15 = arith.constant 0 : index
      %c0_16 = arith.constant 0 : index
      %18 = vector.load %arg8[%c0_15, %c0_16] : memref<8x128xf32, #tpu.memory_space<vmem>>, vector<8x128xf32>
      %c0_17 = arith.constant 0 : index
      %c0_18 = arith.constant 0 : index
      %19 = vector.load %arg6[%c0_17, %c0_18] : memref<1x128xf32, #tpu.memory_space<vmem>>, vector<1x128xf32>
      %20 = vector.broadcast %19 : vector<1x128xf32> to vector<8x128xf32>
      %21 = arith.addf %18, %20 : vector<8x128xf32>
      %c0_19 = arith.constant 0 : index
      %c0_20 = arith.constant 0 : index
      %22 = vector.load %arg7[%c0_19, %c0_20] : memref<8x128xf32, #tpu.memory_space<vmem>>, vector<8x128xf32>
      tpu.vector_store %arg7[%c0_19, %c0_20], %21 {strides = array<i32>} : memref<8x128xf32, #tpu.memory_space<vmem>>, vector<8x128xf32>,
    } else {
    }
    return
  }
  func.func @transform_0(%arg0: i32, %arg1: i32) -> (i32, i32) {
    %c0_i32 = arith.constant 0 : i32
    %c0_i32_0 = arith.constant 0 : i32
    return %arg0, %c0_i32 : i32, i32
  }
  func.func @transform_1(%arg0: i32, %arg1: i32) -> (i32, i32) {
    %c0_i32 = arith.constant 0 : i32
    %c0_i32_0 = arith.constant 0 : i32
    return %c0_i32, %arg1 : i32, i32
  }
  func.func @transform_2(%arg0: i32, %arg1: i32) -> (i32, i32) {
    %c0_i32 = arith.constant 0 : i32
    %c0_i32_0 = arith.constant 0 : i32
    return %c0_i32, %arg1 : i32, i32
  }
  func.func @transform_3(%arg0: i32, %arg1: i32) -> (i32, i32) {
    %c0_i32 = arith.constant 0 : i32
    %c0_i32_0 = arith.constant 0 : i32
    return %arg1, %c0_i32 : i32, i32
  }
  func.func @transform_4(%arg0: i32, %arg1: i32) -> (i32, i32) {
    %c0_i32 = arith.constant 0 : i32
    %c0_i32_0 = arith.constant 0 : i32
    %c0_i32_1 = arith.constant 0 : i32
    return %c0_i32, %c0_i32_0 : i32, i32
  }
  func.func @transform_5(%arg0: i32, %arg1: i32) -> (i32, i32) {
    %c0_i32 = arith.constant 0 : i32
    %c0_i32_0 = arith.constant 0 : i32
    return %arg0, %c0_i32 : i32, i32
  }
}

</mosaic_0001>

<bundles_post_ra>
// kernel: tpu_custom_call.1
= control target key start
LH: loop header
LB: loop body
LE: loop exit
PB: predicated region body
PF: predicated region fallthrough
CT: control target
= control target key end

     0   :  { %10 = vsyncpa [#allocation4], 0  ;;  %s333_s0 = inlined_call_operand.hbm [shape: f32[8,32], index: 0, kind: input, shape index: {}]   ;;  %s334_s1 = inlined_call_operand.hbm [shape: f32[32,32], index: 1, kind: input, shape index: {}]   ;;  %s335_s2 = inlined_call_operand.vmem [shape: f32[1,32], index: 2, kind: input, shape index: {}]   ;;  %s336_s3 = inlined_call_operand.hbm [shape: f32[32,128], index: 3, kind: input, shape index: {}]   ;;  %s337_s4 = inlined_call_operand.vmem [shape: f32[1,128], index: 4, kind: input, shape index: {}]   ;;  %s338_s5 = inlined_call_operand.hbm [shape: f32[8,128], index: 5, kind: output, shape index: {}]  }
   0x1   :  { %11 = vsyncpa [#allocation7], 0  ;;  %s28_s20 = sshll.u32 %s334_s1, 4  ;;  %s29_s20 = int_to_ptr.hbm [resolvable:$true] %s28_s20 }
   0x2   :  { %12 = vsyncpa [#allocation5], 0  ;;  %s277_s21 = smov [#allocation6]   ;;  %s18_s25 = sshll.u32 %s333_s0, 4  ;;  %s19_s25 = int_to_ptr.hbm [resolvable:$true] %s18_s25 }
   0x3   :  { %s30_s22 = sshll.u32 %s277_s21, 4  ;;  %s278_s26 = smov 128   ;;  %s31_s22 = int_to_ptr.vmem [resolvable:$true] %s30_s22 }
   0x4   :  { %s279_s27 = smov 8   ;;  %s280_s28 = smov [#allocation3]  }
   0x5   :  { %36 = dma.hbm_to_vmem [thread:$0]  %s29_s20, 512, %s31_s22, [#allocation7], %s278_s26, %s278_s26, %s279_s27  }
   0x6   :  { %s20_s29 = sshll.u32 %s280_s28, 4  ;;  %s43_s7 = sshll.u32 %s336_s3, 4  ;;  %s21_s29 = int_to_ptr.vmem [resolvable:$true] %s20_s29  ;;  %s44_s7 = int_to_ptr.hbm [resolvable:$true] %s43_s7 }
   0x7   :  { %23 = dma.hbm_to_vmem [thread:$0]  %s19_s25, 128, %s21_s29, [#allocation4]  }
   0x8   :  { %s281_s1 = smov [#allocation8]  }
   0x9   :  { %s45_s8 = sshll.u32 %s281_s1, 4  ;;  %s46_s8 = int_to_ptr.vmem [resolvable:$true] %s45_s8 }
   0xa   :  { %51 = dma.hbm_to_vmem [thread:$0]  %s44_s7, 512, %s46_s8, [#allocation7], %s278_s26, %s278_s26, %s279_s27  }
   0xb   :  { %271 = dma.done.wait [#allocation4], 128  }
   0xc   :  { %272 = vsyncadd [#allocation4], 4294967168 }
   0xd   :  { %273 = dma.done.wait [#allocation7], 1024  }
   0xe   :  { %274 = vsyncadd [#allocation7], 4294966272  ;;  %v75_v0 = vld [vmem:[#allocation6 + $0x18] sm:$0xff]  ;;  %v74_v1 = vld [vmem:[#allocation6 + $0x10] sm:$0xff]  ;;  %vm80_vm0 = vcmask 261120   ;;  %s282_s11 = smov [#allocation9]  }
   0xf   :  { %96 = vmatpush.msra.mxu0 %v75_v0  ;;  %v73_v2 = vld [vmem:[#allocation6 + $0x8] sm:$0xff]  ;;  %v72_v3 = vld [vmem:[#allocation6] sm:$0xff]  ;;  %v71_v4 = vld [vmem:[#allocation3] sm:$0xff]  ;;  %s150_s12 = sshll.u32 %s282_s11, 4  ;;  %s152_s15 = sshll.u32 %s338_s5, 4  ;;  %s151_s12 = int_to_ptr.vmem [resolvable:$true] %s150_s12  ;;  %s153_s15 = int_to_ptr.hbm [resolvable:$true] %s152_s15 }
  0x10   :  { %v109_v5 = vld [vmem:[#allocation8 + $0x18] sm:$0xff]  ;;  %v108_v6 = vld [vmem:[#allocation8 + $0x10] sm:$0xff]  ;;  %v107_v7 = vld [vmem:[#allocation8 + $0x8] sm:$0xff] }
  0x11   :  { %97 = vmatpush.msra.mxu0 %v74_v1  ;;  %125 = vmatpush.msra.mxu1 %v109_v5  ;;  %v106_v8 = vld [vmem:[#allocation8] sm:$0xff]  ;;  %v171_v9 = vld [vmem:[%s335_s2] ss:$0 sm:$0xff] }
  0x12   :  { %v172_v13 = vld [vmem:[%s337_s4] ss:$0 sm:$0xff] }
  0x13   :  { %98 = vmatpush.msra.mxu0 %v73_v2  ;;  %126 = vmatpush.msra.mxu1 %v108_v6 }
  0x15   :  { %99 = vmatpush.msra.mxu0 %v72_v3  ;;  %127 = vmatpush.msra.mxu1 %v107_v7 }
  0x16   :  { %163 = vmatmul.msk.f32.vlgmr.msra.gmra.mxu0 %vm80_vm0, %v71_v4 }
  0x17   :  { %128 = vmatpush.msra.mxu1 %v106_v8 }
  0x93   :  { %v101_v10 = vpop.f32.mrf.mxu0 }
  0x94   :  { %v102_v11 = vadd.f32 %v171_v9, %v101_v10 }
  0x96   :  { %173 = vtanh.f32 %v102_v11 }
  0x9c   :  { %v174_v12 = vpop.eup %173 }
  0x9d   :  { %164 = vmatmul.msk.f32.vlgmr.msra.gmra.mxu1 %vm80_vm0, %v174_v12 }
 0x11a   :  { %v130_v14 = vpop.f32.mrf.mxu1 }
 0x11b   :  { %v143_v15 = vadd.f32 %v172_v13, %v130_v14 }
 0x11d   :  { %144 = vst [vmem:[#allocation9] sm:$0xff] %v143_v15 }
 0x11e   :  { %155 = dma.vmem_to_hbm [thread:$0]  %s151_s12, 128, %s153_s15, [#allocation5]  }
 0x11f   :  { %275 = dma.done.wait [#allocation5], 128  }
 0x120   :  { %276 = vsyncadd [#allocation5], 4294967168 }
 0x121   :  { %160 = vsyncpa [#allocation4], 1 }
 0x122   :  { %161 = vsyncpa [#allocation7], 1 }
 0x123   :  { %162 = vsyncpa [#allocation5], 1 }

</bundles_post_ra>
